<compile_context>
chip_gen: v5e
topology: v5e:2x2
jax: 0.10.0
libtpu: 0.0.40
codegen_flags: <defaults>
</compile_context>

<pallas_src>
from functools import partial

import jax
import jax.numpy as jnp
from jax.experimental import pallas as pl
from jax.experimental.pallas import tpu as pltpu

_LANE = 128
_SUBLANE = 8
_NEG_FILL = -1e30  # padded softmax lanes -> exp underflows to 0 (no NaN risk)


def _round_up(n: int, m: int) -> int:
    return ((n + m - 1) // m) * m


def mlp_kernel(x_ref, w1_ref, b1_ref, w2_ref, b2_ref, o_ref):
    # fc1: [Bp, F]bf16 @ [F, Hp]bf16 -> f32 accum, + f32 bias.
    h = jnp.dot(x_ref[...], w1_ref[...], preferred_element_type=jnp.float32)
    h = h + b1_ref[...]  # padded lanes of b1 hold -1e30

    # Softmax over dim=1 (hidden axis), matching nn.Softmax(dim=1).
    m = jnp.max(h, axis=1, keepdims=True)
    e = jnp.exp(h - m)                         # padded lanes -> exactly 0
    denom = jnp.sum(e, axis=1, keepdims=True)
    p = e * pl.reciprocal(denom, approx=True)  # EUP vrcp; safe after max-subtraction

    # fc2: [Bp, Hp]bf16 @ [Hp, Op]bf16 -> f32 accum, + f32 bias.
    # Padded rows of w2 are zero, so the (zero) padded lanes of p are inert.
    out = jnp.dot(p.astype(jnp.bfloat16), w2_ref[...],
                  preferred_element_type=jnp.float32)
    o_ref[...] = out + b2_ref[...]


def prepare_params(w1, b1, w2, b2):
    """One-time static parameter prep (run once, outside the hot path).

    w1: [F, H], b1: [H] or [1, H], w2: [H, O], b2: [O] or [1, O]
    (weights stored as [in_features, out_features] == PyTorch weight^T).

    Returns padded slabs:
      w1_p [F,  Hp] bf16, b1_p [1, Hp] f32 (pad = -1e30),
      w2_p [Hp, Op] bf16, b2_p [1, Op] f32 (pad = 0).
    """
    F, H = w1.shape
    O = w2.shape[1]
    Hp = _round_up(H, _LANE)
    Op = _round_up(O, _LANE)

    b1 = jnp.reshape(b1, (1, H)).astype(jnp.float32)
    b2 = jnp.reshape(b2, (1, O)).astype(jnp.float32)

    w1_p = jnp.zeros((F, Hp), jnp.bfloat16).at[:, :H].set(w1.astype(jnp.bfloat16))
    w2_p = jnp.zeros((Hp, Op), jnp.bfloat16).at[:H, :O].set(w2.astype(jnp.bfloat16))
    b1_p = jnp.full((1, Hp), _NEG_FILL, jnp.float32).at[:, :H].set(b1)
    b2_p = jnp.zeros((1, Op), jnp.float32).at[:, :O].set(b2)
    return w1_p, b1_p, w2_p, b2_p


@partial(jax.jit, static_argnames=("out_features",))
def neural_net_forward(x, w1_p, b1_p, w2_p, b2_p, *, out_features):
    """x: [B, F] f32; padded params from prepare_params. Returns [B, out_features] f32."""
    B, F = x.shape
    Hp = w1_p.shape[1]
    Op = w2_p.shape[1]
    Bp = _round_up(B, _SUBLANE)

    # Only per-call prep: bf16 cast (+ batch pad if B not a multiple of 8).
    x_b = x.astype(jnp.bfloat16)
    if Bp != B:
        x_b = jnp.zeros((Bp, F), jnp.bfloat16).at[:B, :].set(x_b)

    flops = 2 * Bp * F * Hp + 2 * Bp * Hp * Op + 6 * Bp * Hp
    bytes_accessed = ((Bp * F + F * Hp + Hp * Op) * 2        # bf16 operands
                      + (Hp + Op + Bp * Op) * 4)             # f32 biases + output

    vmem_spec = pl.BlockSpec(memory_space=pltpu.MemorySpace.VMEM)

    # No grid: whole problem (~10 KiB of operands) fits one VMEM tile on every
    # TPU generation.  A parallel batch grid (v7x: 2 TCs) only pays off once
    # per-TC tile compute exceeds the ~0.35 us grid-step overhead (B in the
    # thousands at these F/H/O).
    out_p = pl.pallas_call(
        mlp_kernel,
        out_shape=jax.ShapeDtypeStruct((Bp, Op), jnp.float32),
        in_specs=[vmem_spec] * 5,
        out_specs=vmem_spec,
        cost_estimate=pl.CostEstimate(
            flops=flops, transcendentals=Bp * Hp, bytes_accessed=bytes_accessed),
    )(x_b, w1_p, b1_p, w2_p, b2_p)

    # Slice fuses into this jit; callers that tolerate the padded slab can use
    # out_p[:, :Op] directly.
    return out_p[:B, :out_features]


def reference_forward(x, w1, b1, w2, b2):
    h = x @ w1 + jnp.reshape(b1, (1, -1))
    p = jax.nn.softmax(h, axis=1)
    return p @ w2 + jnp.reshape(b2, (1, -1))


if __name__ == "__main__":
    # Shapes consistent with the module:
    #   input_size  = CountVectorizer vocab size -> 32
    #   hidden_size = 2
    #   output_size = number of classes          -> 4
    batch, input_size, hidden_size, output_size = 8, 32, 2, 4

    key = jax.random.PRNGKey(0)
    kx, kw1, kb1, kw2, kb2 = jax.random.split(key, 5)

    x = jax.random.normal(kx, (batch, input_size), dtype=jnp.float32)

    # Deterministic parameter init (uniform, roughly matching nn.Linear scale),
    # stored as [in_features, out_features] (i.e. PyTorch weight transposed).
    lim1 = 1.0 / (input_size ** 0.5)
    lim2 = 1.0 / (hidden_size ** 0.5)
    w1 = jax.random.uniform(kw1, (input_size, hidden_size), jnp.float32, -lim1, lim1)
    b1 = jax.random.uniform(kb1, (hidden_size,), jnp.float32, -lim1, lim1)
    w2 = jax.random.uniform(kw2, (hidden_size, output_size), jnp.float32, -lim2, lim2)
    b2 = jax.random.uniform(kb2, (output_size,), jnp.float32, -lim2, lim2)

    # One-time static prep (hoisted out of the per-call path).
    w1_p, b1_p, w2_p, b2_p = jax.block_until_ready(prepare_params(w1, b1, w2, b2))

    out = jax.block_until_ready(
        neural_net_forward(x, w1_p, b1_p, w2_p, b2_p, out_features=output_size))

    ref = reference_forward(x, w1, b1, w2, b2)
    assert out.shape == (batch, output_size)
    # bf16 MXU operands (f32 accumulation) + approx reciprocal -> bf16-level tolerance.
    err = jnp.max(jnp.abs(out - ref))
    assert jnp.allclose(out, ref, atol=2e-2, rtol=2e-2), f"max abs err = {err}"

    print("KERNEL_OK")
</pallas_src>

<mosaic_0001>
module attributes {stable_mosaic.version = 11 : i64} {
  func.func @mlp_kernel(%arg0: memref<8x32xbf16, #tpu.memory_space<vmem>>, %arg1: memref<32x128xbf16, #tpu.memory_space<vmem>>, %arg2: memref<1x128xf32, #tpu.memory_space<vmem>>, %arg3: memref<128x128xbf16, #tpu.memory_space<vmem>>, %arg4: memref<1x128xf32, #tpu.memory_space<vmem>>, %arg5: memref<8x128xf32, #tpu.memory_space<vmem>>) attributes {dimension_semantics = [], scalar_prefetch = 0 : i64, scratch_operands = 0 : i64, tpu.core_type = #tpu.core_type<tc>} {
    %c0 = arith.constant 0 : index
    %c0_0 = arith.constant 0 : index
    %0 = vector.load %arg0[%c0, %c0_0] : memref<8x32xbf16, #tpu.memory_space<vmem>>, vector<8x32xbf16>
    %c0_1 = arith.constant 0 : index
    %c0_2 = arith.constant 0 : index
    %1 = vector.load %arg1[%c0_1, %c0_2] : memref<32x128xbf16, #tpu.memory_space<vmem>>, vector<32x128xbf16>
    %cst = arith.constant dense<0.000000e+00> : vector<8x128xf32>
    %2 = tpu.matmul %0, %1, %cst {dimension_numbers = #tpu.dot_dimension_numbers<[1], [0], [0], [1], [0, 0, 1, 1], [], []>} : vector<8x32xbf16>, vector<32x128xbf16>, vector<8x128xf32> -> vector<8x128xf32>
    %c0_3 = arith.constant 0 : index
    %c0_4 = arith.constant 0 : index
    %3 = vector.load %arg2[%c0_3, %c0_4] : memref<1x128xf32, #tpu.memory_space<vmem>>, vector<1x128xf32>
    %4 = vector.broadcast %3 : vector<1x128xf32> to vector<8x128xf32>
    %5 = arith.addf %2, %4 : vector<8x128xf32>
    %cst_5 = arith.constant dense<0xFF800000> : vector<8xf32>
    %6 = vector.multi_reduction <maximumf>, %5, %cst_5 [1] : vector<8x128xf32> to vector<8xf32>
    %7 = vector.shape_cast %6 : vector<8xf32> to vector<8x1xf32>
    %8 = vector.broadcast %7 : vector<8x1xf32> to vector<8x128xf32>
    %9 = arith.subf %5, %8 : vector<8x128xf32>
    %10 = math.exp %9 : vector<8x128xf32>
    %cst_6 = arith.constant dense<0.000000e+00> : vector<8xf32>
    %11 = vector.multi_reduction <add>, %10, %cst_6 [1] : vector<8x128xf32> to vector<8xf32>
    %12 = vector.shape_cast %11 : vector<8xf32> to vector<8x1xf32>
    %13 = tpu.reciprocal %12 {approx = true} : vector<8x1xf32> -> vector<8x1xf32>
    %14 = vector.broadcast %13 : vector<8x1xf32> to vector<8x128xf32>
    %15 = arith.mulf %10, %14 : vector<8x128xf32>
    %16 = arith.truncf %15 : vector<8x128xf32> to vector<8x128xbf16>
    %c0_7 = arith.constant 0 : index
    %c0_8 = arith.constant 0 : index
    %17 = vector.load %arg3[%c0_7, %c0_8] : memref<128x128xbf16, #tpu.memory_space<vmem>>, vector<128x128xbf16>
    %cst_9 = arith.constant dense<0.000000e+00> : vector<8x128xf32>
    %18 = tpu.matmul %16, %17, %cst_9 {dimension_numbers = #tpu.dot_dimension_numbers<[1], [0], [0], [1], [0, 0, 1, 1], [], []>} : vector<8x128xbf16>, vector<128x128xbf16>, vector<8x128xf32> -> vector<8x128xf32>
    %c0_10 = arith.constant 0 : index
    %c0_11 = arith.constant 0 : index
    %19 = vector.load %arg4[%c0_10, %c0_11] : memref<1x128xf32, #tpu.memory_space<vmem>>, vector<1x128xf32>
    %20 = vector.broadcast %19 : vector<1x128xf32> to vector<8x128xf32>
    %21 = arith.addf %18, %20 : vector<8x128xf32>
    %c0_12 = arith.constant 0 : index
    %c0_13 = arith.constant 0 : index
    %22 = vector.load %arg5[%c0_12, %c0_13] : memref<8x128xf32, #tpu.memory_space<vmem>>, vector<8x128xf32>
    tpu.vector_store %arg5[%c0_12, %c0_13], %21 {strides = array<i32>} : memref<8x128xf32, #tpu.memory_space<vmem>>, vector<8x128xf32>,
    return
  }
}

</mosaic_0001>

<bundles_post_ra>
// kernel: neural_net_forward.1
= control target key start
LH: loop header
LB: loop body
LE: loop exit
PB: predicated region body
PF: predicated region fallthrough
CT: control target
= control target key end

     0   :  { %10 = vsyncpa [#allocation3], 0  ;;  %s354_s0 = inlined_call_operand.vmem [shape: bf16[8,32], index: 0, kind: input, shape index: {}]   ;;  %s355_s1 = inlined_call_operand.hbm [shape: bf16[32,128], index: 1, kind: input, shape index: {}]   ;;  %s356_s2 = inlined_call_operand.vmem [shape: f32[1,128], index: 2, kind: input, shape index: {}]   ;;  %s357_s3 = inlined_call_operand.hbm [shape: bf16[128,128], index: 3, kind: input, shape index: {}]   ;;  %s358_s4 = inlined_call_operand.vmem [shape: f32[1,128], index: 4, kind: input, shape index: {}]   ;;  %s359_s5 = inlined_call_operand.vmem [shape: f32[8,128], index: 5, kind: output, shape index: {}]  }
   0x1   :  { %s18_s20 = sshll.u32 %s355_s1, 4  ;;  %s19_s20 = int_to_ptr.hbm [resolvable:$true] %s18_s20 }
   0x2   :  { %11 = vsyncpa [#allocation5], 0  ;;  %s302_s21 = smov [#allocation2]   ;;  %s33_s25 = sshll.u32 %s357_s3, 4  ;;  %s34_s25 = int_to_ptr.hbm [resolvable:$true] %s33_s25 }
   0x3   :  { %s20_s22 = sshll.u32 %s302_s21, 4  ;;  %s303_s26 = smov 64   ;;  %s21_s22 = int_to_ptr.vmem [resolvable:$true] %s20_s22 }
   0x4   :  { %s304_s27 = smov 4   ;;  %s305_s28 = smov [#allocation4]  }
   0x5   :  { %26 = dma.hbm_to_vmem [thread:$0]  %s19_s20, 256, %s21_s22, [#allocation3], %s303_s26, %s303_s26, %s304_s27  }
   0x6   :  { %s35_s29 = sshll.u32 %s305_s28, 4  ;;  %s36_s29 = int_to_ptr.vmem [resolvable:$true] %s35_s29 }
   0x7   :  { %41 = dma.hbm_to_vmem [thread:$0]  %s34_s25, 1024, %s36_s29, [#allocation5], %s303_s26, %s303_s26, %s304_s27  }
   0x8   :  { %298 = dma.done.wait [#allocation3], 256  }
   0x9   :  { %299 = vsyncadd [#allocation3], 4294967040 }
   0xa   :  { %300 = dma.done.wait [#allocation5], 1024  }
   0xb   :  { %301 = vsyncadd [#allocation5], 4294966272  ;;  %v231_v0 = vld [vmem:[#allocation2 + $0x8] sm:$0xff]  ;;  %v230_v1 = vld [vmem:[#allocation2] sm:$0xff]  ;;  %vm74_vm0 = vcmask 261120  }
   0xc   :  { %84 = vmatpush.bf16.msra.mxu0 %v231_v0  ;;  %v53_v2 = vld [vmem:[%s354_s0] sm:$0xf]  ;;  %v239_v7 = vld [vmem:[#allocation4 + $0x38] sm:$0xff]  ;;  %v237_v9 = vld [vmem:[#allocation4 + $0x28] sm:$0xff] }
   0xd   :  { %v244_v3 = vld [vmem:[%s356_s2] ss:$0 sm:$0xff]  ;;  %169 = vmatpush.bf16.msra.mxu1 %v239_v7  ;;  %v236_v10 = vld [vmem:[#allocation4 + $0x20] sm:$0xff]  ;;  %v235_v11 = vld [vmem:[#allocation4 + $0x18] sm:$0xff] }
   0xe   :  { %v238_v8 = vld [vmem:[#allocation4 + $0x30] sm:$0xff]  ;;  %v233_v17 = vld [vmem:[#allocation4 + $0x8] sm:$0xff]  ;;  %v232_v18 = vld [vmem:[#allocation4] sm:$0xff] }
   0xf   :  { %v234_v16 = vld [vmem:[#allocation4 + $0x10] sm:$0xff] }
  0x10   :  { %85 = vmatpush.bf16.msra.mxu0 %v230_v1  ;;  %v245_v23 = vld [vmem:[%s358_s4] ss:$0 sm:$0xff] }
  0x11   :  { %170 = vmatpush.bf16.msra.mxu1 %v238_v8 }
  0x13   :  { %197 = vmatmul.msk.bf16.vlgmr.msra.gmra.mxu0 %vm74_vm0, %v53_v2 }
  0x15   :  { %171 = vmatpush.bf16.msra.mxu1 %v237_v9 }
  0x19   :  { %172 = vmatpush.bf16.msra.mxu1 %v236_v10 }
  0x1d   :  { %173 = vmatpush.bf16.msra.mxu1 %v235_v11 }
  0x21   :  { %174 = vmatpush.bf16.msra.mxu1 %v234_v16 }
  0x25   :  { %175 = vmatpush.bf16.msra.mxu1 %v233_v17 }
  0x29   :  { %176 = vmatpush.bf16.msra.mxu1 %v232_v18 }
  0x90   :  { %v87_v4 = vpop.f32.mrf.mxu0 }
  0x91   :  { %v88_v5 = vadd.f32 %v244_v3, %v87_v4 }
  0x93   :  { %91 = vmax.xlane.f32.xlu0 %v88_v5 }
  0x98   :  { %v89_v6 = vpop.f32.mrf.mxu0 }
 0x106   :  { %v92_v12 = vpop.xlane.xlu0 %91 }
 0x107   :  { %v93_v13 = vsub.f32 %v88_v5, %v92_v12 }
 0x109   :  { %v94_v14 = vmul.f32 1.442695, %v93_v13 }
 0x10b   :  { %246 = vpow2.f32 %v94_v14 }
 0x111   :  { %v247_v15 = vpop.eup %246 }
 0x112   :  { %96 = vadd.xlane.f32.xlu0 %v247_v15 }
 0x185   :  { %v97_v19 = vpop.xlane.xlu0 %96 }
 0x186   :  { %248 = vrcp.f32 %v97_v19 }
 0x18c   :  { %v249_v20 = vpop.eup %248 }
 0x18d   :  { %v99_v21 = vmul.f32 %v249_v20, %v247_v15 }
 0x18f   :  { %v100_v22 = vpack.c.bf16 %v99_v21, %v99_v21 }
 0x191   :  { %177 = vmatmul.bf16.vlgmr.msra.gmra.mxu1 %v100_v22 }
 0x20e   :  { %v178_v24 = vpop.f32.mrf.mxu1 }
 0x20f   :  { %v179_v25 = vadd.f32 %v245_v23, %v178_v24 }
 0x211   :  { %182 = vst [vmem:[%s359_s5] sm:$0xff] %v179_v25 }
 0x216   :  { %v180_v26 = vpop.f32.mrf.mxu1 }
 0x217   :  { %187 = vsyncpa [#allocation3], 1 }
 0x218   :  { %188 = vsyncpa [#allocation5], 1 }

</bundles_post_ra>
